<compile_context>
chip_gen: v7x
topology: tpu7x:2x2x1
jax: 0.10.0
libtpu: 0.0.40
codegen_flags: <defaults>
</compile_context>

<pallas_src>
import math

import jax
import jax.numpy as jnp
from jax import lax
from jax.experimental import pallas as pl
from jax.experimental.pallas import tpu as pltpu

# ----------------------------- config ---------------------------------------
INPUT_SIZE = 16
EMBED_DIM = 32
DENSE_DIM = 64
NUM_HEADS = 4
OUTPUT_SIZE = 10
SEQ_LEN = 8
BATCH = 2
HEAD_DIM = EMBED_DIM // NUM_HEADS
LN_EPS = 1e-5

# Grid over batch-row blocks.  Each grid step processes BATCH_PER_BLOCK whole
# sequences (ROWS = BATCH_PER_BLOCK * SEQ_LEN flattened rows).  For the small
# demo this is one block; for larger batches ROWS grows toward 128 sublanes
# and the "parallel" grid axis spreads blocks across v7x's two TensorCores.
BATCH_PER_BLOCK = min(BATCH, max(1, 128 // SEQ_LEN))
assert BATCH % BATCH_PER_BLOCK == 0
ROWS = BATCH_PER_BLOCK * SEQ_LEN
GRID = BATCH // BATCH_PER_BLOCK
assert ROWS <= 128, "attention-mask lanes must fit one 128-lane tile"

# ------------------- packed parameter layout (host-side) ---------------------
# One (PACK_ROWS, 128) f32 buffer.  Matrices are stored pre-transposed so the
# contraction dimension is the leading (sublane) dimension; every block starts
# at an 8-row tile boundary.  The block-diagonal attention-mask bias and the
# mean-pooling matrix are appended as compile-time constants.
PACK_LANES = 128
R_WE = 0                               # we^T   : (Din, E)
R_WQKV = R_WE + INPUT_SIZE             # wqkv^T : (E, 3E)   (Q cols pre-scaled)
R_WO = R_WQKV + EMBED_DIM              # wo^T   : (E, E)
R_W1 = R_WO + EMBED_DIM                # w1^T   : (E, Dff)
R_W2 = R_W1 + EMBED_DIM                # w2^T   : (Dff, E)
R_WL = R_W2 + DENSE_DIM                # wl^T   : (E, Dout) zero-padded to 128 lanes
R_MASK = R_WL + EMBED_DIM              # mask   : (ROWS, ROWS) additive bias
_MASK_PAD = ((ROWS + 7) // 8) * 8
R_POOL = R_MASK + _MASK_PAD            # pool   : (BATCH_PER_BLOCK, ROWS)
_POOL_PAD = ((BATCH_PER_BLOCK + 7) // 8) * 8
R_VEC = R_POOL + _POOL_PAD             # bias / scale rows, one per 8-row tile
VEC_NAMES = ("be", "bqkv", "bo", "b1", "b2", "g1", "beta1", "g2", "beta2", "bl")
VEC_ROW = {name: R_VEC + 8 * i for i, name in enumerate(VEC_NAMES)}
PACK_ROWS = R_VEC + 8 * len(VEC_NAMES)


# ----------------------------- kernel ---------------------------------------
def transformer_kernel(x_ref, p_ref, out_ref, head_ref):
    E = EMBED_DIM
    Dff = DENSE_DIM
    hd = HEAD_DIM

    x = x_ref[...]                                             # (ROWS, Din)

    # --- pre-transposed weights (contraction dim first -> no in-kernel .T) ---
    we_t = p_ref[R_WE:R_WE + INPUT_SIZE, 0:E]                  # (Din, E)
    wqkv_t = p_ref[R_WQKV:R_WQKV + E, 0:3 * E]                 # (E, 3E)
    wo_t = p_ref[R_WO:R_WO + E, 0:E]                           # (E, E)
    w1_t = p_ref[R_W1:R_W1 + E, 0:Dff]                         # (E, Dff)
    w2_t = p_ref[R_W2:R_W2 + Dff, 0:E]                         # (Dff, E)
    wl_t = p_ref[R_WL:R_WL + E, :]                             # (E, 128) zero-padded
    mask_bias = p_ref[R_MASK:R_MASK + ROWS, 0:ROWS]            # (ROWS, ROWS)
    pool_mat = p_ref[R_POOL:R_POOL + BATCH_PER_BLOCK, 0:ROWS]  # (BPB, ROWS)

    def vec(name, width=None):
        r = VEC_ROW[name]
        if width is None:
            return p_ref[r:r + 1, :]                           # (1, 128)
        return p_ref[r:r + 1, 0:width]                         # (1, width)

    be = vec("be", E)
    bqkv = vec("bqkv", 3 * E)
    bo = vec("bo", E)
    b1 = vec("b1", Dff)
    b2 = vec("b2", E)
    g1 = vec("g1", E)
    beta1 = vec("beta1", E)
    g2 = vec("g2", E)
    beta2 = vec("beta2", E)
    bl = vec("bl")                                             # (1, 128) zero-padded

    # --- embedding: Linear(input_size -> embed_dim) over all flattened rows --
    emb = jnp.dot(x, we_t, preferred_element_type=jnp.float32) + be        # (ROWS, E)

    # --- fused Q/K/V projection (Q columns already scaled by 1/sqrt(hd)) -----
    qkv = jnp.dot(emb, wqkv_t, preferred_element_type=jnp.float32) + bqkv  # (ROWS, 3E)

    # --- multi-head self-attention; heads written to VMEM scratch -------------
    for h in range(NUM_HEADS):  # static unroll; heads are lane slices of qkv
        lo = h * hd
        hi = lo + hd
        qh = qkv[:, lo:hi]
        kh = qkv[:, E + lo:E + hi]
        vh = qkv[:, 2 * E + lo:2 * E + hi]
        # scores = qh @ kh^T without materializing a transpose
        s = lax.dot_general(qh, kh, (((1,), (1,)), ((), ())),
                            preferred_element_type=jnp.float32)            # (ROWS, ROWS)
        s = s + mask_bias                                # block-diagonal batch mask
        m = jnp.max(s, axis=-1, keepdims=True)
        p = jnp.exp(s - m)
        denom = jnp.sum(p, axis=-1, keepdims=True)
        p = p * pl.reciprocal(denom, approx=False)       # exact; cost negligible here
        head_ref[:, lo:hi] = jnp.dot(p, vh, preferred_element_type=jnp.float32)

    # one Wo matmul instead of 4 tiny K=8 pushes
    attn = jnp.dot(head_ref[...], wo_t, preferred_element_type=jnp.float32) + bo

    # --- layernorm helper -----------------------------------------------------
    def layernorm(val, gamma, beta):
        mu = jnp.mean(val, axis=-1, keepdims=True)
        var = jnp.mean((val - mu) ** 2, axis=-1, keepdims=True)
        return (val - mu) * lax.rsqrt(var + LN_EPS) * gamma + beta

    proj_in = layernorm(emb + attn, g1, beta1)                              # (ROWS, E)

    # --- feed-forward: Linear -> ReLU -> Linear -------------------------------
    h1 = jnp.maximum(
        jnp.dot(proj_in, w1_t, preferred_element_type=jnp.float32) + b1, 0.0)
    ff = jnp.dot(h1, w2_t, preferred_element_type=jnp.float32) + b2
    enc = layernorm(proj_in + ff, g2, beta2)                                # (ROWS, E)

    # --- global average pool over sequence via precomputed pooling matrix ----
    pooled = jnp.dot(pool_mat, enc, preferred_element_type=jnp.float32)     # (BPB, E)

    # TODO(synk): nn.Dropout(0.5) is identity at inference time; not modeled here.

    # --- output head (lane-dense: wl_t / bl lanes beyond OUTPUT_SIZE are 0) ---
    out = jnp.dot(pooled, wl_t, preferred_element_type=jnp.float32) + bl    # (BPB, 128)
    out_ref[...] = out.astype(out_ref.dtype)


# ----------------------------- host-side packing (run ONCE at init) ----------
def pack_params(p):
    """Pack all (pre-transposed) parameters + constant mask / pooling matrices
    into one (PACK_ROWS, 128) f32 buffer.  Called once; NOT in the forward path."""
    buf = jnp.zeros((PACK_ROWS, PACK_LANES), jnp.float32)

    def put(b, row, mat):
        return lax.dynamic_update_slice(b, jnp.asarray(mat, jnp.float32), (row, 0))

    # fold the 1/sqrt(head_dim) attention scale into the Q rows of wqkv / bqkv
    scale = 1.0 / math.sqrt(HEAD_DIM)
    wqkv = p["wqkv"].at[0:EMBED_DIM, :].multiply(scale)       # (3E, E)
    bqkv = p["bqkv"].at[:, 0:EMBED_DIM].multiply(scale)       # (1, 3E)

    buf = put(buf, R_WE, p["we"].T)
    buf = put(buf, R_WQKV, wqkv.T)
    buf = put(buf, R_WO, p["wo"].T)
    buf = put(buf, R_W1, p["w1"].T)
    buf = put(buf, R_W2, p["w2"].T)
    buf = put(buf, R_WL, p["wl"].T)

    # block-diagonal additive attention mask (0 within a sequence, -1e30 across)
    r = jnp.arange(ROWS)
    mask = jnp.where((r[:, None] // SEQ_LEN) == (r[None, :] // SEQ_LEN),
                     0.0, -1e30).astype(jnp.float32)
    buf = put(buf, R_MASK, mask)

    # mean-pooling matrix: (BATCH_PER_BLOCK, ROWS), 1/SEQ_LEN on own sequence
    b = jnp.arange(BATCH_PER_BLOCK)
    pool = jnp.where(b[:, None] == (r[None, :] // SEQ_LEN),
                     1.0 / SEQ_LEN, 0.0).astype(jnp.float32)
    buf = put(buf, R_POOL, pool)

    vecs = dict(p)
    vecs["bqkv"] = bqkv
    for name in VEC_NAMES:
        buf = put(buf, VEC_ROW[name], vecs[name])
    return buf


# ----------------------------- wrapper ---------------------------------------
@jax.jit
def transformer_forward(x, packed):
    B, S, Din = x.shape
    assert (B, S, Din) == (BATCH, SEQ_LEN, INPUT_SIZE)
    x_flat = x.reshape(B * S, Din)

    # advisory cost estimate (scheduling hint only)
    rows = B * S
    flops = 2 * rows * Din * EMBED_DIM                       # embedding
    flops += 2 * rows * EMBED_DIM * 3 * EMBED_DIM            # fused qkv
    flops += NUM_HEADS * (2 * rows * HEAD_DIM * ROWS         # scores
                          + 2 * rows * ROWS * HEAD_DIM)      # p @ v
    flops += 2 * rows * EMBED_DIM * EMBED_DIM                # Wo
    flops += 2 * rows * EMBED_DIM * DENSE_DIM                # ffn up
    flops += 2 * rows * DENSE_DIM * EMBED_DIM                # ffn down
    flops += 2 * B * ROWS * EMBED_DIM                        # pooling matmul
    flops += 2 * B * EMBED_DIM * PACK_LANES                  # head (padded lanes)
    transcendentals = NUM_HEADS * rows * ROWS + 2 * rows
    bytes_accessed = (rows * Din + PACK_ROWS * PACK_LANES + B * PACK_LANES) * 4

    # Blocked BlockSpecs stage each block to VMEM with a single DMA (default
    # memory space for blocked specs on TPU); the packed-parameter block index
    # is constant across the grid so it is fetched once, not per step.
    out_padded = pl.pallas_call(
        transformer_kernel,
        out_shape=jax.ShapeDtypeStruct((B, PACK_LANES), jnp.float32),
        grid=(GRID,),
        in_specs=[
            pl.BlockSpec((ROWS, Din), lambda i: (i, 0)),
            pl.BlockSpec((PACK_ROWS, PACK_LANES), lambda i: (0, 0)),
        ],
        out_specs=pl.BlockSpec((BATCH_PER_BLOCK, PACK_LANES), lambda i: (i, 0)),
        scratch_shapes=[pltpu.VMEM((ROWS, EMBED_DIM), jnp.float32)],
        compiler_params=pltpu.CompilerParams(
            dimension_semantics=("parallel",)),
        cost_estimate=pl.CostEstimate(flops=int(flops),
                                      transcendentals=int(transcendentals),
                                      bytes_accessed=int(bytes_accessed)),
    )(x_flat, packed)

    # lane-dense (B, 128) store inside the kernel; slice the real head width here
    return out_padded[:, :OUTPUT_SIZE]


# ----------------------------- reference (pure JAX) ---------------------------
def transformer_ref(x, p):
    emb = x @ p["we"].T + p["be"]                                   # (B, S, E)
    E, hd = EMBED_DIM, HEAD_DIM
    q = emb @ p["wqkv"][0:E].T + p["bqkv"][:, 0:E]
    k = emb @ p["wqkv"][E:2 * E].T + p["bqkv"][:, E:2 * E]
    v = emb @ p["wqkv"][2 * E:].T + p["bqkv"][:, 2 * E:]

    def split(t):  # (B, S, E) -> (B, H, S, hd)
        B, S, _ = t.shape
        return t.reshape(B, S, NUM_HEADS, hd).transpose(0, 2, 1, 3)

    qh, kh, vh = split(q), split(k), split(v)
    scores = jnp.einsum("bhsd,bhtd->bhst", qh, kh) / math.sqrt(hd)
    probs = jax.nn.softmax(scores, axis=-1)
    attn = jnp.einsum("bhst,bhtd->bhsd", probs, vh)
    attn = attn.transpose(0, 2, 1, 3).reshape(emb.shape)
    attn = attn @ p["wo"].T + p["bo"]

    def ln(val, g, b):
        mu = val.mean(-1, keepdims=True)
        var = ((val - mu) ** 2).mean(-1, keepdims=True)
        return (val - mu) * jax.lax.rsqrt(var + LN_EPS) * g + b

    proj_in = ln(emb + attn, p["g1"], p["beta1"])
    h1 = jnp.maximum(proj_in @ p["w1"].T + p["b1"], 0.0)
    ff = h1 @ p["w2"].T + p["b2"]
    enc = ln(proj_in + ff, p["g2"], p["beta2"])
    pooled = enc.mean(axis=1)                                       # (B, E)
    return pooled @ p["wl"].T + p["bl"]


# ----------------------------- parameter init --------------------------------
def init_params(key):
    ks = jax.random.split(key, 10)

    def lin(k, fan_out, fan_in):
        bound = 1.0 / math.sqrt(fan_in)
        return jax.random.uniform(k, (fan_out, fan_in), jnp.float32, -bound, bound)

    return {
        "we": lin(ks[0], EMBED_DIM, INPUT_SIZE),
        "be": jnp.zeros((1, EMBED_DIM), jnp.float32),
        "wqkv": lin(ks[1], 3 * EMBED_DIM, EMBED_DIM),
        "bqkv": 0.01 * jax.random.normal(ks[2], (1, 3 * EMBED_DIM), jnp.float32),
        "wo": lin(ks[3], EMBED_DIM, EMBED_DIM),
        "bo": jnp.zeros((1, EMBED_DIM), jnp.float32),
        "w1": lin(ks[4], DENSE_DIM, EMBED_DIM),
        "b1": 0.01 * jax.random.normal(ks[5], (1, DENSE_DIM), jnp.float32),
        "w2": lin(ks[6], EMBED_DIM, DENSE_DIM),
        "b2": 0.01 * jax.random.normal(ks[7], (1, EMBED_DIM), jnp.float32),
        "g1": jnp.ones((1, EMBED_DIM), jnp.float32),
        "beta1": jnp.zeros((1, EMBED_DIM), jnp.float32),
        "g2": jnp.ones((1, EMBED_DIM), jnp.float32),
        "beta2": jnp.zeros((1, EMBED_DIM), jnp.float32),
        "wl": lin(ks[8], OUTPUT_SIZE, EMBED_DIM),
        "bl": 0.01 * jax.random.normal(ks[9], (1, OUTPUT_SIZE), jnp.float32),
    }


# ----------------------------- main ------------------------------------------
if __name__ == "__main__":
    key = jax.random.PRNGKey(0)
    kx, kp = jax.random.split(key)

    x = jax.random.normal(kx, (BATCH, SEQ_LEN, INPUT_SIZE), jnp.float32)
    params = init_params(kp)

    # pack ONCE at init (hoisted out of the per-call forward path)
    packed = jax.block_until_ready(pack_params(params))

    out = transformer_forward(x, packed)
    out = jax.block_until_ready(out)

    ref = transformer_ref(x, params)
    assert out.shape == (BATCH, OUTPUT_SIZE)
    assert jnp.allclose(out, ref, rtol=2e-3, atol=2e-3), (out, ref)

    print("KERNEL_OK")
</pallas_src>

<mosaic_0001>
module attributes {stable_mosaic.version = 11 : i64} {
  func.func @transformer_kernel(%arg0: i32, %arg1: memref<16x16xf32, #tpu.memory_space<vmem>>, %arg2: memref<312x128xf32, #tpu.memory_space<vmem>>, %arg3: memref<2x128xf32, #tpu.memory_space<vmem>>, %arg4: memref<16x32xf32, #tpu.memory_space<vmem>>) attributes {dimension_semantics = [#tpu.dimension_semantics<parallel>], iteration_bounds = array<i64: 1>, scalar_prefetch = 0 : i64, scratch_operands = 1 : i64, tpu.core_type = #tpu.core_type<tc>, window_params = [{transform_indices = @transform_0, window_bounds = array<i64: 16, 16>}, {pipeline_mode = #tpu.pipeline_mode<synchronous>, transform_indices = @transform_1, window_bounds = array<i64: 312, 128>}, {transform_indices = @transform_2, window_bounds = array<i64: 2, 128>}]} {
    %c0 = arith.constant 0 : index
    %c0_0 = arith.constant 0 : index
    %0 = vector.load %arg1[%c0, %c0_0] : memref<16x16xf32, #tpu.memory_space<vmem>>, vector<16x16xf32>
    %c0_1 = arith.constant 0 : index
    %c0_2 = arith.constant 0 : index
    %1 = vector.load %arg2[%c0_1, %c0_2] : memref<312x128xf32, #tpu.memory_space<vmem>>, vector<16x32xf32>
    %c16 = arith.constant 16 : index
    %c0_3 = arith.constant 0 : index
    %2 = vector.load %arg2[%c16, %c0_3] : memref<312x128xf32, #tpu.memory_space<vmem>>, vector<32x96xf32>
    %c48 = arith.constant 48 : index
    %c0_4 = arith.constant 0 : index
    %3 = vector.load %arg2[%c48, %c0_4] : memref<312x128xf32, #tpu.memory_space<vmem>>, vector<32x32xf32>
    %c80 = arith.constant 80 : index
    %c0_5 = arith.constant 0 : index
    %4 = vector.load %arg2[%c80, %c0_5] : memref<312x128xf32, #tpu.memory_space<vmem>>, vector<32x64xf32>
    %c112 = arith.constant 112 : index
    %c0_6 = arith.constant 0 : index
    %5 = vector.load %arg2[%c112, %c0_6] : memref<312x128xf32, #tpu.memory_space<vmem>>, vector<64x32xf32>
    %c176 = arith.constant 176 : index
    %c0_7 = arith.constant 0 : index
    %6 = vector.load %arg2[%c176, %c0_7] : memref<312x128xf32, #tpu.memory_space<vmem>>, vector<32x128xf32>
    %c208 = arith.constant 208 : index
    %c0_8 = arith.constant 0 : index
    %7 = vector.load %arg2[%c208, %c0_8] : memref<312x128xf32, #tpu.memory_space<vmem>>, vector<16x16xf32>
    %c224 = arith.constant 224 : index
    %c0_9 = arith.constant 0 : index
    %8 = vector.load %arg2[%c224, %c0_9] : memref<312x128xf32, #tpu.memory_space<vmem>>, vector<2x16xf32>
    %c232 = arith.constant 232 : index
    %c0_10 = arith.constant 0 : index
    %9 = vector.load %arg2[%c232, %c0_10] : memref<312x128xf32, #tpu.memory_space<vmem>>, vector<1x32xf32>
    %c240 = arith.constant 240 : index
    %c0_11 = arith.constant 0 : index
    %10 = vector.load %arg2[%c240, %c0_11] : memref<312x128xf32, #tpu.memory_space<vmem>>, vector<1x96xf32>
    %c248 = arith.constant 248 : index
    %c0_12 = arith.constant 0 : index
    %11 = vector.load %arg2[%c248, %c0_12] : memref<312x128xf32, #tpu.memory_space<vmem>>, vector<1x32xf32>
    %c256 = arith.constant 256 : index
    %c0_13 = arith.constant 0 : index
    %12 = vector.load %arg2[%c256, %c0_13] : memref<312x128xf32, #tpu.memory_space<vmem>>, vector<1x64xf32>
    %c264 = arith.constant 264 : index
    %c0_14 = arith.constant 0 : index
    %13 = vector.load %arg2[%c264, %c0_14] : memref<312x128xf32, #tpu.memory_space<vmem>>, vector<1x32xf32>
    %c272 = arith.constant 272 : index
    %c0_15 = arith.constant 0 : index
    %14 = vector.load %arg2[%c272, %c0_15] : memref<312x128xf32, #tpu.memory_space<vmem>>, vector<1x32xf32>
    %c280 = arith.constant 280 : index
    %c0_16 = arith.constant 0 : index
    %15 = vector.load %arg2[%c280, %c0_16] : memref<312x128xf32, #tpu.memory_space<vmem>>, vector<1x32xf32>
    %c288 = arith.constant 288 : index
    %c0_17 = arith.constant 0 : index
    %16 = vector.load %arg2[%c288, %c0_17] : memref<312x128xf32, #tpu.memory_space<vmem>>, vector<1x32xf32>
    %c296 = arith.constant 296 : index
    %c0_18 = arith.constant 0 : index
    %17 = vector.load %arg2[%c296, %c0_18] : memref<312x128xf32, #tpu.memory_space<vmem>>, vector<1x32xf32>
    %c304 = arith.constant 304 : index
    %c0_19 = arith.constant 0 : index
    %18 = vector.load %arg2[%c304, %c0_19] : memref<312x128xf32, #tpu.memory_space<vmem>>, vector<1x128xf32>
    %cst = arith.constant dense<0.000000e+00> : vector<16x32xf32>
    %19 = tpu.matmul %0, %1, %cst {dimension_numbers = #tpu.dot_dimension_numbers<[1], [0], [0], [1], [0, 0, 1, 1], [], []>} : vector<16x16xf32>, vector<16x32xf32>, vector<16x32xf32> -> vector<16x32xf32>
    %20 = vector.broadcast %9 : vector<1x32xf32> to vector<16x32xf32>
    %21 = arith.addf %19, %20 : vector<16x32xf32>
    %cst_20 = arith.constant dense<0.000000e+00> : vector<16x96xf32>
    %22 = tpu.matmul %21, %2, %cst_20 {dimension_numbers = #tpu.dot_dimension_numbers<[1], [0], [0], [1], [0, 0, 1, 1], [], []>} : vector<16x32xf32>, vector<32x96xf32>, vector<16x96xf32> -> vector<16x96xf32>
    %23 = vector.broadcast %10 : vector<1x96xf32> to vector<16x96xf32>
    %24 = arith.addf %22, %23 : vector<16x96xf32>
    %25 = vector.extract_strided_slice %24 {offsets = [0, 0], sizes = [16, 8], strides = [1, 1]} : vector<16x96xf32> to vector<16x8xf32>
    %26 = vector.extract_strided_slice %24 {offsets = [0, 32], sizes = [16, 8], strides = [1, 1]} : vector<16x96xf32> to vector<16x8xf32>
    %27 = vector.extract_strided_slice %24 {offsets = [0, 64], sizes = [16, 8], strides = [1, 1]} : vector<16x96xf32> to vector<16x8xf32>
    %cst_21 = arith.constant dense<0.000000e+00> : vector<16x16xf32>
    %28 = tpu.matmul %25, %26, %cst_21 {dimension_numbers = #tpu.dot_dimension_numbers<[1], [1], [0], [0], [0, 0, 1, 0], [], []>} : vector<16x8xf32>, vector<16x8xf32>, vector<16x16xf32> -> vector<16x16xf32>
    %29 = arith.addf %28, %7 : vector<16x16xf32>
    %cst_22 = arith.constant dense<0xFF800000> : vector<16xf32>
    %30 = vector.multi_reduction <maximumf>, %29, %cst_22 [1] : vector<16x16xf32> to vector<16xf32>
    %31 = vector.shape_cast %30 : vector<16xf32> to vector<16x1xf32>
    %32 = vector.broadcast %31 : vector<16x1xf32> to vector<16x16xf32>
    %33 = arith.subf %29, %32 : vector<16x16xf32>
    %34 = math.exp %33 : vector<16x16xf32>
    %cst_23 = arith.constant dense<0.000000e+00> : vector<16xf32>
    %35 = vector.multi_reduction <add>, %34, %cst_23 [1] : vector<16x16xf32> to vector<16xf32>
    %36 = vector.shape_cast %35 : vector<16xf32> to vector<16x1xf32>
    %37 = tpu.reciprocal %36 : vector<16x1xf32> -> vector<16x1xf32>
    %38 = vector.broadcast %37 : vector<16x1xf32> to vector<16x16xf32>
    %39 = arith.mulf %34, %38 : vector<16x16xf32>
    %cst_24 = arith.constant dense<0.000000e+00> : vector<16x8xf32>
    %40 = tpu.matmul %39, %27, %cst_24 {dimension_numbers = #tpu.dot_dimension_numbers<[1], [0], [0], [1], [0, 0, 1, 1], [], []>} : vector<16x16xf32>, vector<16x8xf32>, vector<16x8xf32> -> vector<16x8xf32>
    %c0_25 = arith.constant 0 : index
    %c0_26 = arith.constant 0 : index
    %41 = vector.load %arg4[%c0_25, %c0_26] : memref<16x32xf32, #tpu.memory_space<vmem>>, vector<16x8xf32>
    tpu.vector_store %arg4[%c0_25, %c0_26], %40 {strides = array<i32>} : memref<16x32xf32, #tpu.memory_space<vmem>>, vector<16x8xf32>,
    %42 = vector.extract_strided_slice %24 {offsets = [0, 8], sizes = [16, 8], strides = [1, 1]} : vector<16x96xf32> to vector<16x8xf32>
    %43 = vector.extract_strided_slice %24 {offsets = [0, 40], sizes = [16, 8], strides = [1, 1]} : vector<16x96xf32> to vector<16x8xf32>
    %44 = vector.extract_strided_slice %24 {offsets = [0, 72], sizes = [16, 8], strides = [1, 1]} : vector<16x96xf32> to vector<16x8xf32>
    %cst_27 = arith.constant dense<0.000000e+00> : vector<16x16xf32>
    %45 = tpu.matmul %42, %43, %cst_27 {dimension_numbers = #tpu.dot_dimension_numbers<[1], [1], [0], [0], [0, 0, 1, 0], [], []>} : vector<16x8xf32>, vector<16x8xf32>, vector<16x16xf32> -> vector<16x16xf32>
    %46 = arith.addf %45, %7 : vector<16x16xf32>
    %cst_28 = arith.constant dense<0xFF800000> : vector<16xf32>
    %47 = vector.multi_reduction <maximumf>, %46, %cst_28 [1] : vector<16x16xf32> to vector<16xf32>
    %48 = vector.shape_cast %47 : vector<16xf32> to vector<16x1xf32>
    %49 = vector.broadcast %48 : vector<16x1xf32> to vector<16x16xf32>
    %50 = arith.subf %46, %49 : vector<16x16xf32>
    %51 = math.exp %50 : vector<16x16xf32>
    %cst_29 = arith.constant dense<0.000000e+00> : vector<16xf32>
    %52 = vector.multi_reduction <add>, %51, %cst_29 [1] : vector<16x16xf32> to vector<16xf32>
    %53 = vector.shape_cast %52 : vector<16xf32> to vector<16x1xf32>
    %54 = tpu.reciprocal %53 : vector<16x1xf32> -> vector<16x1xf32>
    %55 = vector.broadcast %54 : vector<16x1xf32> to vector<16x16xf32>
    %56 = arith.mulf %51, %55 : vector<16x16xf32>
    %cst_30 = arith.constant dense<0.000000e+00> : vector<16x8xf32>
    %57 = tpu.matmul %56, %44, %cst_30 {dimension_numbers = #tpu.dot_dimension_numbers<[1], [0], [0], [1], [0, 0, 1, 1], [], []>} : vector<16x16xf32>, vector<16x8xf32>, vector<16x8xf32> -> vector<16x8xf32>
    %c0_31 = arith.constant 0 : index
    %c8 = arith.constant 8 : index
    %58 = vector.load %arg4[%c0_31, %c8] : memref<16x32xf32, #tpu.memory_space<vmem>>, vector<16x8xf32>
    tpu.vector_store %arg4[%c0_31, %c8], %57 {strides = array<i32>} : memref<16x32xf32, #tpu.memory_space<vmem>>, vector<16x8xf32>,
    %59 = vector.extract_strided_slice %24 {offsets = [0, 16], sizes = [16, 8], strides = [1, 1]} : vector<16x96xf32> to vector<16x8xf32>
    %60 = vector.extract_strided_slice %24 {offsets = [0, 48], sizes = [16, 8], strides = [1, 1]} : vector<16x96xf32> to vector<16x8xf32>
    %61 = vector.extract_strided_slice %24 {offsets = [0, 80], sizes = [16, 8], strides = [1, 1]} : vector<16x96xf32> to vector<16x8xf32>
    %cst_32 = arith.constant dense<0.000000e+00> : vector<16x16xf32>
    %62 = tpu.matmul %59, %60, %cst_32 {dimension_numbers = #tpu.dot_dimension_numbers<[1], [1], [0], [0], [0, 0, 1, 0], [], []>} : vector<16x8xf32>, vector<16x8xf32>, vector<16x16xf32> -> vector<16x16xf32>
    %63 = arith.addf %62, %7 : vector<16x16xf32>
    %cst_33 = arith.constant dense<0xFF800000> : vector<16xf32>
    %64 = vector.multi_reduction <maximumf>, %63, %cst_33 [1] : vector<16x16xf32> to vector<16xf32>
    %65 = vector.shape_cast %64 : vector<16xf32> to vector<16x1xf32>
    %66 = vector.broadcast %65 : vector<16x1xf32> to vector<16x16xf32>
    %67 = arith.subf %63, %66 : vector<16x16xf32>
    %68 = math.exp %67 : vector<16x16xf32>
    %cst_34 = arith.constant dense<0.000000e+00> : vector<16xf32>
    %69 = vector.multi_reduction <add>, %68, %cst_34 [1] : vector<16x16xf32> to vector<16xf32>
    %70 = vector.shape_cast %69 : vector<16xf32> to vector<16x1xf32>
    %71 = tpu.reciprocal %70 : vector<16x1xf32> -> vector<16x1xf32>
    %72 = vector.broadcast %71 : vector<16x1xf32> to vector<16x16xf32>
    %73 = arith.mulf %68, %72 : vector<16x16xf32>
    %cst_35 = arith.constant dense<0.000000e+00> : vector<16x8xf32>
    %74 = tpu.matmul %73, %61, %cst_35 {dimension_numbers = #tpu.dot_dimension_numbers<[1], [0], [0], [1], [0, 0, 1, 1], [], []>} : vector<16x16xf32>, vector<16x8xf32>, vector<16x8xf32> -> vector<16x8xf32>
    %c0_36 = arith.constant 0 : index
    %c16_37 = arith.constant 16 : index
    %75 = vector.load %arg4[%c0_36, %c16_37] : memref<16x32xf32, #tpu.memory_space<vmem>>, vector<16x8xf32>
    tpu.vector_store %arg4[%c0_36, %c16_37], %74 {strides = array<i32>} : memref<16x32xf32, #tpu.memory_space<vmem>>, vector<16x8xf32>,
    %76 = vector.extract_strided_slice %24 {offsets = [0, 24], sizes = [16, 8], strides = [1, 1]} : vector<16x96xf32> to vector<16x8xf32>
    %77 = vector.extract_strided_slice %24 {offsets = [0, 56], sizes = [16, 8], strides = [1, 1]} : vector<16x96xf32> to vector<16x8xf32>
    %78 = vector.extract_strided_slice %24 {offsets = [0, 88], sizes = [16, 8], strides = [1, 1]} : vector<16x96xf32> to vector<16x8xf32>
    %cst_38 = arith.constant dense<0.000000e+00> : vector<16x16xf32>
    %79 = tpu.matmul %76, %77, %cst_38 {dimension_numbers = #tpu.dot_dimension_numbers<[1], [1], [0], [0], [0, 0, 1, 0], [], []>} : vector<16x8xf32>, vector<16x8xf32>, vector<16x16xf32> -> vector<16x16xf32>
    %80 = arith.addf %79, %7 : vector<16x16xf32>
    %cst_39 = arith.constant dense<0xFF800000> : vector<16xf32>
    %81 = vector.multi_reduction <maximumf>, %80, %cst_39 [1] : vector<16x16xf32> to vector<16xf32>
    %82 = vector.shape_cast %81 : vector<16xf32> to vector<16x1xf32>
    %83 = vector.broadcast %82 : vector<16x1xf32> to vector<16x16xf32>
    %84 = arith.subf %80, %83 : vector<16x16xf32>
    %85 = math.exp %84 : vector<16x16xf32>
    %cst_40 = arith.constant dense<0.000000e+00> : vector<16xf32>
    %86 = vector.multi_reduction <add>, %85, %cst_40 [1] : vector<16x16xf32> to vector<16xf32>
    %87 = vector.shape_cast %86 : vector<16xf32> to vector<16x1xf32>
    %88 = tpu.reciprocal %87 : vector<16x1xf32> -> vector<16x1xf32>
    %89 = vector.broadcast %88 : vector<16x1xf32> to vector<16x16xf32>
    %90 = arith.mulf %85, %89 : vector<16x16xf32>
    %cst_41 = arith.constant dense<0.000000e+00> : vector<16x8xf32>
    %91 = tpu.matmul %90, %78, %cst_41 {dimension_numbers = #tpu.dot_dimension_numbers<[1], [0], [0], [1], [0, 0, 1, 1], [], []>} : vector<16x16xf32>, vector<16x8xf32>, vector<16x8xf32> -> vector<16x8xf32>
    %c0_42 = arith.constant 0 : index
    %c24 = arith.constant 24 : index
    %92 = vector.load %arg4[%c0_42, %c24] : memref<16x32xf32, #tpu.memory_space<vmem>>, vector<16x8xf32>
    tpu.vector_store %arg4[%c0_42, %c24], %91 {strides = array<i32>} : memref<16x32xf32, #tpu.memory_space<vmem>>, vector<16x8xf32>,
    %c0_43 = arith.constant 0 : index
    %c0_44 = arith.constant 0 : index
    %93 = vector.load %arg4[%c0_43, %c0_44] : memref<16x32xf32, #tpu.memory_space<vmem>>, vector<16x32xf32>
    %cst_45 = arith.constant dense<0.000000e+00> : vector<16x32xf32>
    %94 = tpu.matmul %93, %3, %cst_45 {dimension_numbers = #tpu.dot_dimension_numbers<[1], [0], [0], [1], [0, 0, 1, 1], [], []>} : vector<16x32xf32>, vector<32x32xf32>, vector<16x32xf32> -> vector<16x32xf32>
    %95 = vector.broadcast %11 : vector<1x32xf32> to vector<16x32xf32>
    %96 = arith.addf %94, %95 : vector<16x32xf32>
    %97 = arith.addf %21, %96 : vector<16x32xf32>
    %cst_46 = arith.constant dense<0.000000e+00> : vector<16xf32>
    %98 = vector.multi_reduction <add>, %97, %cst_46 [1] : vector<16x32xf32> to vector<16xf32>
    %99 = vector.shape_cast %98 : vector<16xf32> to vector<16x1xf32>
    %cst_47 = arith.constant 3.200000e+01 : f32
    %100 = vector.broadcast %cst_47 : f32 to vector<16x1xf32>
    %101 = arith.divf %99, %100 : vector<16x1xf32>
    %102 = vector.broadcast %101 : vector<16x1xf32> to vector<16x32xf32>
    %103 = arith.subf %97, %102 : vector<16x32xf32>
    %104 = arith.mulf %103, %103 : vector<16x32xf32>
    %cst_48 = arith.constant dense<0.000000e+00> : vector<16xf32>
    %105 = vector.multi_reduction <add>, %104, %cst_48 [1] : vector<16x32xf32> to vector<16xf32>
    %106 = vector.shape_cast %105 : vector<16xf32> to vector<16x1xf32>
    %cst_49 = arith.constant 3.200000e+01 : f32
    %107 = vector.broadcast %cst_49 : f32 to vector<16x1xf32>
    %108 = arith.divf %106, %107 : vector<16x1xf32>
    %109 = vector.broadcast %101 : vector<16x1xf32> to vector<16x32xf32>
    %110 = arith.subf %97, %109 : vector<16x32xf32>
    %cst_50 = arith.constant 9.99999974E-6 : f32
    %111 = vector.broadcast %cst_50 : f32 to vector<16x1xf32>
    %112 = arith.addf %108, %111 : vector<16x1xf32>
    %113 = math.rsqrt %112 : vector<16x1xf32>
    %114 = vector.broadcast %113 : vector<16x1xf32> to vector<16x32xf32>
    %115 = arith.mulf %110, %114 : vector<16x32xf32>
    %116 = vector.broadcast %14 : vector<1x32xf32> to vector<16x32xf32>
    %117 = arith.mulf %115, %116 : vector<16x32xf32>
    %118 = vector.broadcast %15 : vector<1x32xf32> to vector<16x32xf32>
    %119 = arith.addf %117, %118 : vector<16x32xf32>
    %cst_51 = arith.constant dense<0.000000e+00> : vector<16x64xf32>
    %120 = tpu.matmul %119, %4, %cst_51 {dimension_numbers = #tpu.dot_dimension_numbers<[1], [0], [0], [1], [0, 0, 1, 1], [], []>} : vector<16x32xf32>, vector<32x64xf32>, vector<16x64xf32> -> vector<16x64xf32>
    %121 = vector.broadcast %12 : vector<1x64xf32> to vector<16x64xf32>
    %122 = arith.addf %120, %121 : vector<16x64xf32>
    %cst_52 = arith.constant 0.000000e+00 : f32
    %123 = vector.broadcast %cst_52 : f32 to vector<16x64xf32>
    %124 = arith.maximumf %122, %123 : vector<16x64xf32>
    %cst_53 = arith.constant dense<0.000000e+00> : vector<16x32xf32>
    %125 = tpu.matmul %124, %5, %cst_53 {dimension_numbers = #tpu.dot_dimension_numbers<[1], [0], [0], [1], [0, 0, 1, 1], [], []>} : vector<16x64xf32>, vector<64x32xf32>, vector<16x32xf32> -> vector<16x32xf32>
    %126 = vector.broadcast %13 : vector<1x32xf32> to vector<16x32xf32>
    %127 = arith.addf %125, %126 : vector<16x32xf32>
    %128 = arith.addf %119, %127 : vector<16x32xf32>
    %cst_54 = arith.constant dense<0.000000e+00> : vector<16xf32>
    %129 = vector.multi_reduction <add>, %128, %cst_54 [1] : vector<16x32xf32> to vector<16xf32>
    %130 = vector.shape_cast %129 : vector<16xf32> to vector<16x1xf32>
    %cst_55 = arith.constant 3.200000e+01 : f32
    %131 = vector.broadcast %cst_55 : f32 to vector<16x1xf32>
    %132 = arith.divf %130, %131 : vector<16x1xf32>
    %133 = vector.broadcast %132 : vector<16x1xf32> to vector<16x32xf32>
    %134 = arith.subf %128, %133 : vector<16x32xf32>
    %135 = arith.mulf %134, %134 : vector<16x32xf32>
    %cst_56 = arith.constant dense<0.000000e+00> : vector<16xf32>
    %136 = vector.multi_reduction <add>, %135, %cst_56 [1] : vector<16x32xf32> to vector<16xf32>
    %137 = vector.shape_cast %136 : vector<16xf32> to vector<16x1xf32>
    %cst_57 = arith.constant 3.200000e+01 : f32
    %138 = vector.broadcast %cst_57 : f32 to vector<16x1xf32>
    %139 = arith.divf %137, %138 : vector<16x1xf32>
    %140 = vector.broadcast %132 : vector<16x1xf32> to vector<16x32xf32>
    %141 = arith.subf %128, %140 : vector<16x32xf32>
    %cst_58 = arith.constant 9.99999974E-6 : f32
    %142 = vector.broadcast %cst_58 : f32 to vector<16x1xf32>
    %143 = arith.addf %139, %142 : vector<16x1xf32>
    %144 = math.rsqrt %143 : vector<16x1xf32>
    %145 = vector.broadcast %144 : vector<16x1xf32> to vector<16x32xf32>
    %146 = arith.mulf %141, %145 : vector<16x32xf32>
    %147 = vector.broadcast %16 : vector<1x32xf32> to vector<16x32xf32>
    %148 = arith.mulf %146, %147 : vector<16x32xf32>
    %149 = vector.broadcast %17 : vector<1x32xf32> to vector<16x32xf32>
    %150 = arith.addf %148, %149 : vector<16x32xf32>
    %cst_59 = arith.constant dense<0.000000e+00> : vector<2x32xf32>
    %151 = tpu.matmul %8, %150, %cst_59 {dimension_numbers = #tpu.dot_dimension_numbers<[1], [0], [0], [1], [0, 0, 1, 1], [], []>} : vector<2x16xf32>, vector<16x32xf32>, vector<2x32xf32> -> vector<2x32xf32>
    %cst_60 = arith.constant dense<0.000000e+00> : vector<2x128xf32>
    %152 = tpu.matmul %151, %6, %cst_60 {dimension_numbers = #tpu.dot_dimension_numbers<[1], [0], [0], [1], [0, 0, 1, 1], [], []>} : vector<2x32xf32>, vector<32x128xf32>, vector<2x128xf32> -> vector<2x128xf32>
    %153 = vector.broadcast %18 : vector<1x128xf32> to vector<2x128xf32>
    %154 = arith.addf %152, %153 : vector<2x128xf32>
    %c0_61 = arith.constant 0 : index
    %c0_62 = arith.constant 0 : index
    %155 = vector.load %arg3[%c0_61, %c0_62] : memref<2x128xf32, #tpu.memory_space<vmem>>, vector<2x128xf32>
    tpu.vector_store %arg3[%c0_61, %c0_62], %154 {strides = array<i32>} : memref<2x128xf32, #tpu.memory_space<vmem>>, vector<2x128xf32>,
    return
  }
  func.func @transform_0(%arg0: i32) -> (i32, i32) {
    %c0_i32 = arith.constant 0 : i32
    %c0_i32_0 = arith.constant 0 : i32
    return %arg0, %c0_i32 : i32, i32
  }
  func.func @transform_1(%arg0: i32) -> (i32, i32) {
    %c0_i32 = arith.constant 0 : i32
    %c0_i32_0 = arith.constant 0 : i32
    %c0_i32_1 = arith.constant 0 : i32
    return %c0_i32, %c0_i32_0 : i32, i32
  }
  func.func @transform_2(%arg0: i32) -> (i32, i32) {
    %c0_i32 = arith.constant 0 : i32
    %c0_i32_0 = arith.constant 0 : i32
    return %arg0, %c0_i32 : i32, i32
  }
}

</mosaic_0001>

<bundles_post_ra>
// kernel: transformer_forward.1
= control target key start
LH: loop header
LB: loop body
LE: loop exit
PB: predicated region body
PF: predicated region fallthrough
CT: control target
= control target key end

     0   :  { %7 = vsyncpa [#allocation4], 0  ;;  %s2314_s0 = inlined_call_operand.hbm [shape: f32[16,16], index: 0, kind: input, shape index: {}]   ;;  %s2315_s1 = inlined_call_operand.hbm [shape: f32[312,128], index: 1, kind: input, shape index: {}]   ;;  %s2316_s2 = inlined_call_operand.hbm [shape: f32[2,128], index: 2, kind: output, shape index: {}]  }
   0x1   :  { %8 = vsyncpa [#allocation7], 0 }
   0x2   :  { %9 = vsyncpa [#allocation5], 0  ;;  %s2112_s9 = smov [#allocation3]   ;;  %s2040_s13 = scalar_lea.hbm %s2314_s0, 256 }
   0x3   :  { %s15_s10 = sshll.u32 %s2112_s9, 4  ;;  %p2041_p0 = scmp.ne.s32.totalorder %s2314_s0, %s2040_s13  ;;  %s16_s10 = int_to_ptr.vmem [resolvable:$true] %s15_s10 }
   0x4   :  { %p2044_p1 = scmp.lt.u32.totalorder %s2040_s13, %s2314_s0 }
   0x6   :  { %p2046_p2 = pnand %p2044_p1, %p2041_p0 }
   0x8   :  { %2049 = shalt.err (!%p2046_p2)
}
   0x9   :  { %s2050_s18 = scalar_lea.vmem %s16_s10, 256  ;;  %p2055_p4 = scmp.lt.s32.totalorder %s16_s10, %s16_s10 }
   0xa   :  { %p2051_p3 = scmp.ne.s32.totalorder %s16_s10, %s2050_s18  ;;  %p2056_p5 = scmp.lt.s32.totalorder %s2050_s18, %s2050_s18 }
   0xc   :  { %p2057_p6 = por %p2056_p5, %p2055_p4 }
   0xe   :  { %p2058_p7 = pnand %p2057_p6, %p2051_p3 }
  0x10   :  { %2061 = shalt.err (!%p2058_p7)
}
  0x11   :  { %s2113_s19 = smov 128   ;;  %s2114_s20 = smov 8  }
  0x12   :  { %21 = dma.hbm_to_vmem [thread:$0]  %s2314_s0, 256, %s16_s10, [#allocation4], %s2113_s19, %s2113_s19, %s2114_s20  }
  0x13   :  { %s2115_s23 = smov [#allocation6]   ;;  %s2062_s27 = scalar_lea.hbm %s2315_s1, 4992 }
  0x14   :  { %s27_s24 = sshll.u32 %s2115_s23, 4  ;;  %p2063_p8 = scmp.ne.s32.totalorder %s2315_s1, %s2062_s27  ;;  %s28_s24 = int_to_ptr.vmem [resolvable:$true] %s27_s24 }
  0x15   :  { %p2066_p9 = scmp.lt.u32.totalorder %s2062_s27, %s2315_s1 }
  0x17   :  { %p2068_p10 = pnand %p2066_p9, %p2063_p8 }
  0x19   :  { %2071 = shalt.err (!%p2068_p10)
}
  0x1a   :  { %s2072_s4 = scalar_lea.vmem %s28_s24, 4992  ;;  %p2077_p12 = scmp.lt.s32.totalorder %s28_s24, %s28_s24 }
  0x1b   :  { %p2073_p11 = scmp.ne.s32.totalorder %s28_s24, %s2072_s4  ;;  %p2078_p13 = scmp.lt.s32.totalorder %s2072_s4, %s2072_s4 }
  0x1d   :  { %p2079_p0 = por %p2078_p13, %p2077_p12 }
  0x1f   :  { %p2080_p1 = pnand %p2079_p0, %p2073_p11 }
  0x21   :  { %2083 = shalt.err (!%p2080_p1)
}
  0x22   :  { %33 = dma.hbm_to_vmem [thread:$0]  %s2315_s1, 4992, %s28_s24, [#allocation7], %s2113_s19, %s2113_s19, %s2114_s20  }
  0x23   :  { %2106 = dma.done.wait [#allocation4], 256  }
  0x24   :  { %2107 = vsyncadd [#allocation4], 4294967040 }
  0x25   :  { %2108 = dma.done.wait [#allocation7], 4992  }
  0x26   :  { %2109 = vsyncadd [#allocation7], 4294962304  ;;  %vm85_vm0 = vcmask 130048   ;;  %v42_v0 = vld [vmem:[#allocation6] sm:$0xff]  ;;  %v43_v1 = vld [vmem:[#allocation6 + $0x8] sm:$0xff]  ;;  %vm171_vm1 = vcmask 261120  }
  0x27   :  { %v40_v2 = vld [vmem:[#allocation3] sm:$0xff]  ;;  %v1846_v3 = vpack.c.bf16 %v43_v1, %v42_v0  ;;  %v45_v5 = vld [vmem:[#allocation6 + $0x18] sm:$0xff]  ;;  %v46_v8 = vld [vmem:[#allocation6 + $0x20] sm:$0xff]  ;;  %vm259_vm2 = vcmask 64512   ;;  %s2116_s1 = smov 120   ;;  %s2117_s6 = smov 96  }
  0x28   :  { %1717 = vmatprep.mubr.msk.f32.mxu0 %vm85_vm0, %v40_v2  ;;  %v44_v4 = vld [vmem:[#allocation6 + $0x10] sm:$0xff]  ;;  %v41_v7 = vld [vmem:[#allocation3 + $0x8] sm:$0xff]  ;;  %v47_v9 = vld [vmem:[#allocation6 + $0x28] sm:$0xff]  ;;  %s2118_s7 = smov 88   ;;  %s2119_s8 = smov 64   ;;  %vm662_vm4 = vcmask 130112  }
  0x29   :  { %v1850_v6 = vpack.c.bf16 %v45_v5, %v44_v4  ;;  %1847 = vmatprep.subr.bf16.mxu0 %v1846_v3  ;;  %v1854_v10 = vpack.c.bf16 %v47_v9, %v46_v8  ;;  %v1595_v11 = vld [vmem:[#allocation6 + $0xe8] ss:$0 sm:$0xff]  ;;  %v1598_v16 = vld [vmem:[#allocation6 + $0xf0] ss:$0 sm:$0xff]  ;;  %vm2200_vm3 = vmpackc.low %vm259_vm2, %vm259_vm2  ;;  %s2120_s9 = smov 80   ;;  %s2121_s10 = smov 56  }
  0x2a   :  { %1849 = vmatpush3.bf16.msra.mxu0 %v1846_v3  ;;  %v2216_v33 = vld [vmem:[#allocation6 + $0xd8] sm:$0xff]  ;;  %v2218_v34 = vld [vmem:[#allocation6 + $0xd0] sm:$0xff]  ;;  %s2122_s11 = smov 112   ;;  %s2123_s12 = smov 72   ;;  %vm873_vm5 = vcmask 195712   ;;  %vm1084_vm6 = vcmask 261312  }
  0x2b   :  { %1851 = vmatprep.subr.bf16.mxu1 %v1850_v6  ;;  %s2124_s13 = smov 104   ;;  %s2125_s14 = smov 48   ;;  %vm1306_vm7 = vcmask 523264   ;;  %vm2130_vm8 = vmmov 0  }
  0x2c   :  { %1853 = vmatpush3.bf16.msra.mxu1 %v1850_v6  ;;  %s2126_s15 = smov 40   ;;  %s2127_s16 = smov 16  }
  0x2d   :  { %1718 = vmatmul.mubr.msk.f32.vlgmr.msra.gmra.mrb[0].mxu0 %vm85_vm0, %v41_v7  ;;  %1855 = vmatprep.subr.bf16.mxu1 %v1854_v10  ;;  %s2128_s17 = smov 24   ;;  %s2132_s18 = smov [#allocation8]  }
  0x2e   :  { %s1585_s19 = sshll.u32 %s2132_s18, 4  ;;  %s1586_s19 = int_to_ptr.vmem [resolvable:$true] %s1585_s19 }
  0x2f   :  { %p2089_p3 = scmp.lt.s32.totalorder %s1586_s19, %s1586_s19 }
  0x30   :  { %1857 = vmatpush3.bf16.msra.mxu1 %v1854_v10 }
 0x100   :  { %v1719_v12 = vpop.f32.mrb[0].mxu0 }
 0x101   :  { %v158_v13 = vpop.f32.mrb[1].mxu0  ;;  %v2178_v15 = vadd.f32 %v1719_v12, %v1595_v11 }
 0x102   :  { %v2176_v14 = vadd.f32 %v1595_v11, %v158_v13 }
 0x104   :  { %1728 = vmatprep.mubr.msk.f32.mxu1 %vm171_vm1, %v2176_v14 }
 0x105   :  { %1729 = vmatmul.mubr.msk.f32.vlgmr.msra.gmra.mrb[0].mxu1 %vm171_vm1, %v2178_v15 }
 0x1d8   :  { %v1730_v17 = vpop.f32.mrb[0].mxu1 }
 0x1d9   :  { %v2184_v18 = vadd.f32 %v1730_v17, %v1598_v16  ;;  %v244_v19 = vpop.f32.mrb[1].mxu1 }
 0x1da   :  { %v2186_v20 = vadd.f32 %v1598_v16, %v244_v19 }
 0x1dc   :  { %454 = vrot.lane.b32.xlu1 %v2186_v20, %s2116_s1  ;;  %1735 = vmatprep.mubr.msk.f32.mxu0 %vm259_vm2, %v2186_v20  ;;  %v2193_v21 = vpack.i.bf16 %v2184_v18, %v2186_v20 }
 0x1de   :  { %1961 = vrot.lane.b32.xlu0 %v2193_v21, %s2117_s6 }
 0x1e0   :  { %456 = vrot.lane.b32.xlu1 %v2184_v18, %s2116_s1 }
 0x1e2   :  { %1966 = vrot.lane.b32.xlu0 %v2193_v21, %s2118_s7 }
 0x24e   :  { %v455_v31 = vpop.permute.xlu1 %454 }
 0x250   :  { %v1962_v22 = vpop.permute.xlu0 %1961 }
 0x251   :  { %v1964_v23 = vunpack.i.h.bf16 %v1962_v22  ;;  %v1963_v24 = vunpack.i.l.bf16 %v1962_v22 }
 0x252   :  { %v457_v32 = vpop.permute.xlu1 %456 }
 0x253   :  { %v1858_v26 = vpack.c.bf16 %v1964_v23, %v1963_v24 }
 0x254   :  { %v1967_v27 = vpop.permute.xlu0 %1966 }
 0x255   :  { %v1969_v28 = vunpack.i.h.bf16 %v1967_v27  ;;  %v1968_v29 = vunpack.i.l.bf16 %v1967_v27  ;;  %1860 = vmatprep.subr.msk.bf16.mxu0 %vm2200_vm3, %v1858_v26 }
 0x256   :  { %1863 = vmatpush3.bf16.xpose.msk.msra.mxu0 %vm2200_vm3, %v1858_v26 }
 0x257   :  { %v1868_v30 = vpack.c.bf16 %v1969_v28, %v1968_v29 }
 0x259   :  { %1870 = vmatprep.subr.msk.bf16.mxu0 %vm2200_vm3, %v1868_v30 }
 0x25d   :  { %1736 = vmatmul.mubr.msk.f32.vlgmr.msra.gmra.mrb[2].mxu0 %vm259_vm2, %v2184_v18 }
 0x25e   :  { %1873 = vmatpush3.bf16.xpose.msk.msra.mxu0 %vm2200_vm3, %v1868_v30  ;;  %1749 = vmatprep.mubr.msk.f32.mxu0 %vm259_vm2, %v455_v31 }
 0x265   :  { %1750 = vmatmul.mubr.msk.f32.vlgmr.msra.gmra.mrb[4].mxu0 %vm259_vm2, %v457_v32 }
 0x330   :  { %v1737_v35 = vpop.f32.mrb[2].mxu0 }
 0x331   :  { %v340_v36 = vadd.f32 %v1737_v35, %v2216_v33  ;;  %v334_v37 = vpop.f32.mrb[3].mxu0 }
 0x332   :  { %v335_v38 = vadd.f32 %v334_v37, %v2218_v34 }
 0x333   :  { %v346_v39 = vsel %vm85_vm0, %v340_v36, -inf }
 0x334   :  { %347 = vmax.xlane.f32.xlu1 %v346_v39  ;;  %v343_v40 = vsel %vm85_vm0, %v335_v38, -inf }
 0x335   :  { %344 = vmax.xlane.f32.xlu0 %v343_v40 }
 0x338   :  { %v1751_v41 = vpop.f32.mrb[4].mxu0 }
 0x339   :  { %v536_v42 = vpop.f32.mrb[5].mxu0  ;;  %v542_v44 = vadd.f32 %v1751_v41, %v2216_v33 }
 0x33a   :  { %v537_v43 = vadd.f32 %v536_v42, %v2218_v34 }
 0x33b   :  { %v548_v46 = vsel %vm85_vm0, %v542_v44, -inf }
 0x33c   :  { %v545_v45 = vsel %vm85_vm0, %v537_v43, -inf }
 0x33d   :  { %546 = vmax.xlane.f32.xlu0 %v545_v45 }
 0x341   :  { %549 = vmax.xlane.f32.xlu0 %v548_v46 }
 0x345   :  { %1971 = vrot.lane.b32.xlu1 %v2193_v21, %s2119_s8 }
 0x3c1   :  { %v348_v47 = vpop.xlane.xlu1 %347 }
 0x3c2   :  { %v350_v48 = vsub.f32 %v340_v36, %v348_v47  ;;  %v345_v49 = vpop.xlane.xlu0 %344 }
 0x3c3   :  { %v349_v50 = vsub.f32 %v335_v38, %v345_v49 }
 0x3c4   :  { %v353_v51 = vmul.f32 1.442695, %v350_v48 }
 0x3c5   :  { %v351_v52 = vmul.f32 1.442695, %v349_v50  ;;  %v1972_v53 = vpop.permute.xlu1 %1971 }
 0x3c6   :  { %2000 = vpow2.f32 %v353_v51  ;;  %v1974_v54 = vunpack.i.h.bf16 %v1972_v53  ;;  %v1973_v55 = vunpack.i.l.bf16 %v1972_v53 }
 0x3c7   :  { %2002 = vpow2.f32 %v351_v52 }
 0x3c8   :  { %v1864_v56 = vpack.c.bf16 %v1974_v54, %v1973_v55 }
 0x3ca   :  { %1865 = vmatprep.subr.bf16.mxu1 %v1864_v56  ;;  %v547_v57 = vpop.xlane.xlu0 %546 }
 0x3cb   :  { %1867 = vmatpush3.bf16.msra.mxu1 %v1864_v56  ;;  %v551_v3 = vsub.f32 %v537_v43, %v547_v57 }
 0x3cd   :  { %v553_v4 = vmul.f32 1.442695, %v551_v3 }
 0x3ce   :  { %v550_v58 = vpop.xlane.xlu0 %549 }
 0x3cf   :  { %v552_v59 = vsub.f32 %v542_v44, %v550_v58 }
 0x3d0   :  { %v2001_v60 = vpop.eup %2000 }
 0x3d1   :  { %v2003_v61 = vpop.eup %2002  ;;  %v555_v62 = vmul.f32 1.442695, %v552_v59  ;;  %v358_v63 = vsel %vm85_vm0, %v2001_v60, 0.0 }
 0x3d2   :  { %359 = vadd.xlane.f32.xlu0 %v358_v63  ;;  %v355_v0 = vsel %vm85_vm0, %v2003_v61, 0.0 }
 0x3d3   :  { %2004 = vpow2.f32 %v555_v62  ;;  %356 = vadd.xlane.f32.xlu1 %v355_v0 }
 0x3d4   :  { %2006 = vpow2.f32 %v553_v4 }
 0x3dd   :  { %v2005_v1 = vpop.eup %2004 }
 0x3de   :  { %v560_v2 = vsel %vm85_vm0, %v2005_v1, 0.0  ;;  %v2007_v5 = vpop.eup %2006 }
 0x3df   :  { %561 = vadd.xlane.f32.xlu0 %v560_v2  ;;  %v557_v6 = vsel %vm85_vm0, %v2007_v5, 0.0 }
 0x3e4   :  { %1981 = vrot.lane.b32.xlu1 %v2193_v21, %s2120_s9 }
 0x3f5   :  { %1976 = vrot.lane.b32.xlu0 %v2193_v21, %s2121_s10 }
 0x3f9   :  { %667 = vrot.lane.b32.xlu0 %v2184_v18, %s2122_s11 }
 0x408   :  { %558 = vadd.xlane.f32.xlu1 %v557_v6 }
 0x419   :  { %665 = vrot.lane.b32.xlu1 %v2186_v20, %s2122_s11 }
 0x45f   :  { %v360_v7 = vpop.xlane.xlu0 %359 }
 0x460   :  { %2008 = vrcp.f32 %v360_v7  ;;  %v357_v8 = vpop.xlane.xlu1 %356 }
 0x461   :  { %2010 = vrcp.f32 %v357_v8 }
 0x464   :  { %v1982_v16 = vpop.permute.xlu1 %1981 }
 0x465   :  { %v1984_v19 = vunpack.i.h.bf16 %v1982_v16  ;;  %v1983_v22 = vunpack.i.l.bf16 %v1982_v16 }
 0x467   :  { %v1878_v27 = vpack.c.bf16 %v1984_v19, %v1983_v22 }
 0x46a   :  { %v2009_v9 = vpop.eup %2008 }
 0x46b   :  { %v2011_v10 = vpop.eup %2010  ;;  %v364_v13 = vmul.f32 %v2009_v9, %v2001_v60 }
 0x46c   :  { %v562_v11 = vpop.xlane.xlu0 %561  ;;  %v363_v12 = vmul.f32 %v2011_v10, %v2003_v61 }
 0x46d   :  { %2012 = vrcp.f32 %v562_v11 }
 0x46e   :  { %1742 = vmatprep.mubr.msk.f32.mxu1 %vm85_vm0, %v363_v12 }
 0x46f   :  { %1743 = vmatmul.mubr.msk.f32.vlgmr.msra.gmra.mrb[2].mxu1 %vm85_vm0, %v364_v13 }
 0x470   :  { %v1977_v17 = vpop.permute.xlu0 %1976 }
 0x471   :  { %v1979_v23 = vunpack.i.h.bf16 %v1977_v17  ;;  %v1978_v24 = vunpack.i.l.bf16 %v1977_v17 }
 0x473   :  { %v1874_v26 = vpack.c.bf16 %v1979_v23, %v1978_v24 }
 0x474   :  { %v668_v36 = vpop.permute.xlu0 %667 }
 0x475   :  { %1875 = vmatprep.subr.bf16.mxu1 %v1874_v26 }
 0x476   :  { %1877 = vmatpush3.bf16.msra.mxu1 %v1874_v26 }
 0x477   :  { %1880 = vmatprep.subr.msk.bf16.mxu1 %vm2200_vm3, %v1878_v27  ;;  %v2013_v29 = vpop.eup %2012 }
 0x478   :  { %v566_v32 = vmul.f32 %v2013_v29, %v2005_v1 }
 0x495   :  { %v559_v28 = vpop.xlane.xlu1 %558 }
 0x496   :  { %2014 = vrcp.f32 %v559_v28 }
 0x499   :  { %v666_v35 = vpop.permute.xlu1 %665 }
 0x4a0   :  { %v2015_v30 = vpop.eup %2014 }
 0x4a1   :  { %v565_v31 = vmul.f32 %v2015_v30, %v2007_v5 }
 0x4a3   :  { %1756 = vmatprep.mubr.msk.f32.mxu1 %vm85_vm0, %v565_v31 }
 0x4a4   :  { %1757 = vmatmul.mubr.msk.f32.vlgmr.msra.gmra.mrb[4].mxu1 %vm85_vm0, %v566_v32 }
 0x4a5   :  { %1883 = vmatpush3.bf16.xpose.msk.msra.mxu1 %vm2200_vm3, %v1878_v27  ;;  %1763 = vmatprep.mubr.msk.f32.mxu1 %vm259_vm2, %v666_v35 }
 0x4ac   :  { %1764 = vmatmul.mubr.msk.f32.vlgmr.msra.gmra.mrb[6].mxu1 %vm259_vm2, %v668_v36 }
 0x542   :  { %v1744_v37 = vpop.f32.mrb[2].mxu1 }
 0x543   :  { %453 = vst.msk [vmem:[#allocation2 + $0x8] sm:$0xff] %vm259_vm2, %v1744_v37  ;;  %v443_v38 = vpop.f32.mrb[3].mxu1 }
 0x544   :  { %452 = vst.msk [vmem:[#allocation2] sm:$0xff] %vm259_vm2, %v443_v38 }
 0x577   :  { %v2249_v39 = vpop.f32.mrb[4].mxu1 }
 0x578   :  { %v2251_v40 = vpop.f32.mrb[5].mxu1 }
 0x57f   :  { %v1765_v41 = vpop.f32.mrb[6].mxu1 }
 0x580   :  { %v753_v42 = vadd.f32 %v1765_v41, %v2216_v33  ;;  %v747_v43 = vpop.f32.mrb[7].mxu1 }
 0x581   :  { %v748_v44 = vadd.f32 %v747_v43, %v2218_v34  ;;  %v48_v43 = vld [vmem:[#allocation6 + $0x30] sm:$0xff] }
 0x582   :  { %v759_v45 = vsel %vm85_vm0, %v753_v42, -inf }
 0x583   :  { %760 = vmax.xlane.f32.xlu0 %v759_v45  ;;  %v756_v46 = vsel %vm85_vm0, %v748_v44, -inf }
 0x584   :  { %757 = vmax.xlane.f32.xlu1 %v756_v46  ;;  %v50_v46 = vld [vmem:[#allocation6 + $0x40] sm:$0xff] }
 0x610   :  { %v761_v47 = vpop.xlane.xlu0 %760 }
 0x611   :  { %v763_v48 = vsub.f32 %v753_v42, %v761_v47  ;;  %v758_v49 = vpop.xlane.xlu1 %757  ;;  %v51_v47 = vld [vmem:[#allocation6 + $0x48] sm:$0xff] }
 0x612   :  { %v762_v50 = vsub.f32 %v748_v44, %v758_v49  ;;  %v49_v44 = vld [vmem:[#allocation6 + $0x38] sm:$0xff] }
 0x613   :  { %v766_v51 = vmul.f32 1.442695, %v763_v48  ;;  %v1898_v45 = vpack.c.bf16 %v49_v44, %v48_v43  ;;  %v1902_v48 = vpack.c.bf16 %v51_v47, %v50_v46  ;;  %v1630_v44 = vld [vmem:[#allocation6 + $0x100] ss:$0 sm:$0xff] }
 0x614   :  { %v764_v52 = vmul.f32 1.442695, %v762_v50 }
 0x615   :  { %2016 = vpow2.f32 %v766_v51 }
 0x616   :  { %2018 = vpow2.f32 %v764_v52 }
 0x61f   :  { %v2017_v53 = vpop.eup %2016 }
 0x620   :  { %v2019_v54 = vpop.eup %2018  ;;  %v771_v55 = vsel %vm85_vm0, %v2017_v53, 0.0 }
 0x621   :  { %772 = vadd.xlane.f32.xlu1 %v771_v55  ;;  %v768_v56 = vsel %vm85_vm0, %v2019_v54, 0.0  ;;  %v1625_v55 = vld [vmem:[#allocation6 + $0xf8] ss:$0 sm:$0xff] }
 0x622   :  { %769 = vadd.xlane.f32.xlu0 %v768_v56 }
 0x632   :  { %1991 = vrot.lane.b32.xlu1 %v2193_v21, %s2123_s12 }
 0x636   :  { %876 = vrot.lane.b32.xlu1 %v2186_v20, %s2124_s13 }
 0x638   :  { %1986 = vrot.lane.b32.xlu0 %v2193_v21, %s2125_s14 }
 0x63c   :  { %878 = vrot.lane.b32.xlu0 %v2184_v18, %s2124_s13 }
 0x6ae   :  { %v773_v57 = vpop.xlane.xlu1 %772 }
 0x6af   :  { %2020 = vrcp.f32 %v773_v57  ;;  %v770_v58 = vpop.xlane.xlu0 %769 }
 0x6b0   :  { %2022 = vrcp.f32 %v770_v58 }
 0x6b2   :  { %v1992_v59 = vpop.permute.xlu1 %1991 }
 0x6b3   :  { %v1987_v60 = vpop.permute.xlu0 %1986  ;;  %v1994_v61 = vunpack.i.h.bf16 %v1992_v59  ;;  %v1993_v62 = vunpack.i.l.bf16 %v1992_v59 }
 0x6b4   :  { %v1989_v63 = vunpack.i.h.bf16 %v1987_v60  ;;  %v1988_v0 = vunpack.i.l.bf16 %v1987_v60 }
 0x6b5   :  { %v1888_v2 = vpack.c.bf16 %v1994_v61, %v1993_v62 }
 0x6b6   :  { %v1884_v1 = vpack.c.bf16 %v1989_v63, %v1988_v0  ;;  %v877_v5 = vpop.permute.xlu1 %876 }
 0x6b7   :  { %v879_v6 = vpop.permute.xlu0 %878 }
 0x6b8   :  { %1885 = vmatprep.subr.bf16.mxu0 %v1884_v1 }
 0x6b9   :  { %v2021_v3 = vpop.eup %2020  ;;  %1887 = vmatpush3.bf16.msra.mxu0 %v1884_v1 }
 0x6ba   :  { %v2023_v20 = vpop.eup %2022  ;;  %1890 = vmatprep.subr.msk.bf16.mxu0 %vm2200_vm3, %v1888_v2  ;;  %v777_v4 = vmul.f32 %v2021_v3, %v2017_v53 }
 0x6bb   :  { %v776_v18 = vmul.f32 %v2023_v20, %v2019_v54 }
 0x6bd   :  { %1770 = vmatprep.mubr.msk.f32.mxu0 %vm85_vm0, %v776_v18 }
 0x6be   :  { %1771 = vmatmul.mubr.msk.f32.vlgmr.msra.gmra.mrb[6].mxu0 %vm85_vm0, %v777_v4 }
 0x6bf   :  { %1777 = vmatprep.mubr.msk.f32.mxu0 %vm259_vm2, %v877_v5 }
 0x6c2   :  { %1893 = vmatpush3.bf16.xpose.msk.msra.mxu0 %vm2200_vm3, %v1888_v2 }
 0x6c9   :  { %1778 = vmatmul.mubr.msk.f32.vlgmr.msra.gmra.mrb[8].mxu0 %vm259_vm2, %v879_v6 }
 0x791   :  { %v1772_v7 = vpop.f32.mrb[6].mxu0 }
 0x792   :  { %v856_v8 = vpop.f32.mrb[7].mxu0 }
 0x79c   :  { %v1779_v9 = vpop.f32.mrb[8].mxu0 }
 0x79d   :  { %v964_v10 = vadd.f32 %v1779_v9, %v2216_v33  ;;  %v958_v11 = vpop.f32.mrb[9].mxu0  ;;  %v54_v9 = vld [vmem:[#allocation6 + $0x60] sm:$0xff] }
 0x79e   :  { %v959_v12 = vadd.f32 %v958_v11, %v2218_v34 }
 0x79f   :  { %v970_v13 = vsel %vm85_vm0, %v964_v10, -inf }
 0x7a0   :  { %971 = vmax.xlane.f32.xlu0 %v970_v13  ;;  %v967_v16 = vsel %vm85_vm0, %v959_v12, -inf  ;;  %v57_v13 = vld [vmem:[#allocation6 + $0x78] sm:$0xff] }
 0x7a1   :  { %968 = vmax.xlane.f32.xlu1 %v967_v16  ;;  %v58_v16 = vld [vmem:[#allocation6 + $0x80] sm:$0xff] }
 0x82d   :  { %v972_v17 = vpop.xlane.xlu0 %971 }
 0x82e   :  { %v974_v25 = vsub.f32 %v964_v10, %v972_v17  ;;  %v969_v19 = vpop.xlane.xlu1 %968  ;;  %v55_v10 = vld [vmem:[#allocation6 + $0x68] sm:$0xff] }
 0x82f   :  { %v973_v22 = vsub.f32 %v959_v12, %v969_v19  ;;  %v1910_v11 = vpack.c.bf16 %v55_v10, %v54_v9  ;;  %v56_v12 = vld [vmem:[#allocation6 + $0x70] sm:$0xff] }
 0x830   :  { %v977_v23 = vmul.f32 1.442695, %v974_v25  ;;  %v1914_v17 = vpack.c.bf16 %v57_v13, %v56_v12  ;;  %v59_v25 = vld [vmem:[#allocation6 + $0x88] sm:$0xff] }
 0x831   :  { %v975_v24 = vmul.f32 1.442695, %v973_v22  ;;  %v1918_v19 = vpack.c.bf16 %v59_v25, %v58_v16  ;;  %v60_v22 = vld [vmem:[#allocation6 + $0x90] sm:$0xff] }
 0x832   :  { %2024 = vpow2.f32 %v977_v23  ;;  %v61_v23 = vld [vmem:[#allocation6 + $0x98] sm:$0xff] }
 0x833   :  { %2026 = vpow2.f32 %v975_v24  ;;  %v1922_v24 = vpack.c.bf16 %v61_v23, %v60_v22 }
 0x83c   :  { %v2025_v26 = vpop.eup %2024 }
 0x83d   :  { %v2027_v27 = vpop.eup %2026  ;;  %v982_v33 = vsel %vm85_vm0, %v2025_v26, 0.0 }
 0x83e   :  { %983 = vadd.xlane.f32.xlu1 %v982_v33  ;;  %v979_v34 = vsel %vm85_vm0, %v2027_v27, 0.0 }
 0x83f   :  { %980 = vadd.xlane.f32.xlu0 %v979_v34 }
 0x84f   :  { %656 = vrot.lane.b32.xlu1 %v2251_v40, %s2114_s20 }
 0x853   :  { %658 = vrot.lane.b32.xlu1 %v2249_v39, %s2114_s20  ;;  %s2084_s20 = scalar_lea.vmem %s1586_s19, 32 }
 0x854   :  { %p2085_p2 = scmp.ne.s32.totalorder %s1586_s19, %s2084_s20  ;;  %p2090_p4 = scmp.lt.s32.totalorder %s2084_s20, %s2084_s20 }
 0x855   :  { %1996 = vrot.lane.b32.xlu0 %v2193_v21, %s2126_s15 }
 0x856   :  { %p2091_p5 = por %p2090_p4, %p2089_p3 }
 0x857   :  { %869 = vrot.lane.b32.xlu1 %v1772_v7, %s2127_s16  ;;  %v53_v7 = vld [vmem:[#allocation6 + $0x58] sm:$0xff] }
 0x858   :  { %p2092_p6 = pnand %p2091_p5, %p2085_p2 }
 0x859   :  { %867 = vrot.lane.b32.xlu0 %v856_v8, %s2127_s16 }
 0x8cb   :  { %v984_v28 = vpop.xlane.xlu1 %983 }
 0x8cc   :  { %2028 = vrcp.f32 %v984_v28  ;;  %v981_v29 = vpop.xlane.xlu0 %980 }
 0x8cd   :  { %2030 = vrcp.f32 %v981_v29 }
 0x8cf   :  { %v657_v30 = vpop.permute.xlu1 %656 }
 0x8d0   :  { %663 = vst.msk [vmem:[#allocation2] sm:$0xff] %vm662_vm4, %v657_v30  ;;  %v1997_v31 = vpop.permute.xlu0 %1996 }
 0x8d1   :  { %v1999_v32 = vunpack.i.h.bf16 %v1997_v31  ;;  %v1998_v35 = vunpack.i.l.bf16 %v1997_v31  ;;  %v1628_v31 = vld [vmem:[#allocation6 + $0x110] ss:$0 sm:$0xff] }
 0x8d3   :  { %v1894_v36 = vpack.c.bf16 %v1999_v32, %v1998_v35  ;;  %v659_v37 = vpop.permute.xlu1 %658  ;;  %v1629_v35 = vld [vmem:[#allocation6 + $0x118] ss:$0 sm:$0xff] }
 0x8d4   :  { %664 = vst.msk [vmem:[#allocation2 + $0x8] sm:$0xff] %vm662_vm4, %v659_v37  ;;  %v868_v38 = vpop.permute.xlu0 %867 }
 0x8d5   :  { %874 = vst.msk [vmem:[#allocation2] sm:$0xff] %vm873_vm5, %v868_v38  ;;  %1895 = vmatprep.subr.bf16.mxu1 %v1894_v36 }
 0x8d6   :  { %v2029_v21 = vpop.eup %2028  ;;  %1897 = vmatpush3.bf16.msra.mxu1 %v1894_v36 }
 0x8d7   :  { %v2031_v39 = vpop.eup %2030  ;;  %v870_v40 = vpop.permute.xlu1 %869  ;;  %v988_v42 = vmul.f32 %v2029_v21, %v2025_v26  ;;  %1899 = vmatprep.subr.bf16.mxu1 %v1898_v45 }
 0x8d8   :  { %875 = vst.msk [vmem:[#allocation2 + $0x8] sm:$0xff] %vm873_vm5, %v870_v40  ;;  %v987_v41 = vmul.f32 %v2031_v39, %v2027_v27 }
 0x8da   :  { %1784 = vmatprep.mubr.msk.f32.mxu1 %vm85_vm0, %v987_v41  ;;  %v62_v41 = vld [vmem:[#allocation6 + $0xa0] sm:$0xff] }
 0x8db   :  { %1785 = vmatmul.mubr.msk.f32.vlgmr.msra.gmra.mrb[8].mxu1 %vm85_vm0, %v988_v42  ;;  %v63_v42 = vld [vmem:[#allocation6 + $0xa8] sm:$0xff] }
 0x8dc   :  { %1901 = vmatpush3.bf16.msra.mxu1 %v1898_v45  ;;  %v1926_v43 = vpack.c.bf16 %v63_v42, %v62_v41 }
 0x8dd   :  { %1903 = vmatprep.subr.bf16.mxu1 %v1902_v48 }
 0x8e0   :  { %1905 = vmatpush3.bf16.msra.mxu1 %v1902_v48 }
 0x8e1   :  { %1915 = vmatprep.subr.bf16.mxu1 %v1914_v17 }
 0x9ae   :  { %v1786_v49 = vpop.f32.mrb[8].mxu1 }
 0x9af   :  { %1080 = vrot.lane.b32.xlu1 %v1786_v49, %s2128_s17  ;;  %v1067_v50 = vpop.f32.mrb[9].mxu1 }
 0x9b0   :  { %1078 = vrot.lane.b32.xlu0 %v1067_v50, %s2128_s17 }
 0xa21   :  { %v1081_v51 = vpop.permute.xlu1 %1080 }
 0xa22   :  { %1086 = vst.msk [vmem:[#allocation2 + $0x8] sm:$0xff] %vm1084_vm6, %v1081_v51  ;;  %v1079_v52 = vpop.permute.xlu0 %1078  ;;  %v1633_v51 = vld [vmem:[#allocation6 + $0x108] ss:$0 sm:$0xff] }
 0xa23   :  { %1085 = vst.msk [vmem:[#allocation2] sm:$0xff] %vm1084_vm6, %v1079_v52 }
 0xa29   :  { %v1088_v54 = vld [vmem:[#allocation2 + $0x8] sm:$0xff] }
 0xa2a   :  { %v1087_v53 = vld [vmem:[#allocation2] sm:$0xff] }
 0xa2b   :  { %1795 = vmatprep.mubr.msk.f32.mxu1 %vm171_vm1, %v1087_v53 }
 0xa2c   :  { %1796 = vmatmul.mubr.msk.f32.vlgmr.msra.gmra.mrb[10].mxu1 %vm171_vm1, %v1088_v54 }
 0xa2d   :  { %1917 = vmatpush3.bf16.msra.mxu1 %v1914_v17  ;;  %v1637_v17 = vld [vmem:[#allocation6 + $0x128] ss:$0 sm:$0xff] }
 0xa2e   :  { %1919 = vmatprep.subr.bf16.mxu1 %v1918_v19 }
 0xa31   :  { %1921 = vmatpush3.bf16.msra.mxu1 %v1918_v19 }
 0xa32   :  { %1923 = vmatprep.subr.bf16.mxu1 %v1922_v24 }
 0xa35   :  { %1925 = vmatpush3.bf16.msra.mxu1 %v1922_v24  ;;  %v64_v24 = vld [vmem:[#allocation6 + $0xb0] sm:$0xff] }
 0xa36   :  { %1927 = vmatprep.subr.bf16.mxu1 %v1926_v43 }
 0xa39   :  { %1929 = vmatpush3.bf16.msra.mxu1 %v1926_v43 }
 0xaff   :  { %v1797_v56 = vpop.f32.mrb[10].mxu1 }
 0xb00   :  { %v1171_v57 = vadd.f32 %v1797_v56, %v1625_v55  ;;  %v1165_v58 = vpop.f32.mrb[11].mxu1 }
 0xb01   :  { %v1166_v59 = vadd.f32 %v1625_v55, %v1165_v58 }
 0xb02   :  { %v1175_v60 = vadd.f32 %v1171_v57, %v2178_v15 }
 0xb03   :  { %v1174_v61 = vadd.f32 %v1166_v59, %v2176_v14  ;;  %v52_v14 = vld [vmem:[#allocation6 + $0x50] sm:$0xff] }
 0xb04   :  { %v1179_v62 = vsel %vm171_vm1, %v1175_v60, 0.0  ;;  %v1906_v8 = vpack.c.bf16 %v53_v7, %v52_v14 }
 0xb05   :  { %1180 = vadd.xlane.f32.xlu1 %v1179_v62  ;;  %v1176_v63 = vsel %vm171_vm1, %v1174_v61, 0.0 }
 0xb06   :  { %1177 = vadd.xlane.f32.xlu0 %v1176_v63  ;;  %1907 = vmatprep.subr.bf16.mxu0 %v1906_v8 }
 0xb07   :  { %1909 = vmatpush3.bf16.msra.mxu0 %v1906_v8 }
 0xb08   :  { %1911 = vmatprep.subr.bf16.mxu0 %v1910_v11 }
 0xb0b   :  { %1913 = vmatpush3.bf16.msra.mxu0 %v1910_v11  ;;  %v1636_v11 = vld [vmem:[#allocation6 + $0x120] ss:$0 sm:$0xff] }
 0xb92   :  { %v1181_v0 = vpop.xlane.xlu1 %1180 }
 0xb93   :  { %v1184_v1 = vmul.f32 0.03125, %v1181_v0  ;;  %v1178_v2 = vpop.xlane.xlu0 %1177 }
 0xb94   :  { %v1183_v3 = vmul.f32 0.03125, %v1178_v2 }
 0xb95   :  { %v1186_v20 = vsub.f32 %v1175_v60, %v1184_v1 }
 0xb96   :  { %v1185_v18 = vsub.f32 %v1174_v61, %v1183_v3 }
 0xb97   :  { %v1188_v6 = vmul.f32 %v1186_v20, %v1186_v20 }
 0xb98   :  { %v1187_v4 = vmul.f32 %v1185_v18, %v1185_v18 }
 0xb99   :  { %v1192_v15 = vsel %vm171_vm1, %v1188_v6, 0.0 }
 0xb9a   :  { %v1189_v5 = vsel %vm171_vm1, %v1187_v4, 0.0  ;;  %v2129_v4 = vmov 0.0|0.0  }
 0xb9b   :  { %1190 = vadd.xlane.f32.xlu0 %v1189_v5  ;;  %1930 = vmatprep.subr.bf16.mxu0 %v2129_v4  ;;  %v2131_v5 = vmov 0.0  }
 0xb9f   :  { %1193 = vadd.xlane.f32.xlu0 %v1192_v15 }
 0xc28   :  { %v1191_v26 = vpop.xlane.xlu0 %1190 }
 0xc29   :  { %v1195_v27 = vmul.f32 0.03125, %v1191_v26  ;;  %v65_v26 = vld [vmem:[#allocation6 + $0xb8] sm:$0xff] }
 0xc2b   :  { %v1197_v33 = vadd.f32 1e-05, %v1195_v27 }
 0xc2c   :  { %v1194_v34 = vpop.xlane.xlu0 %1193 }
 0xc2d   :  { %2032 = vrsqrt.f32 %v1197_v33  ;;  %v1196_v28 = vmul.f32 0.03125, %v1194_v34  ;;  %v70_v33 = vld [vmem:[#allocation6 + $0xe0] sm:$0x3]  ;;  %v1934_v34 = vpack.c.bf16 %v65_v26, %v64_v24 }
 0xc2f   :  { %v1198_v29 = vadd.f32 1e-05, %v1196_v28  ;;  %v66_v28 = vld [vmem:[#allocation6 + $0xc0] sm:$0xff] }
 0xc31   :  { %2034 = vrsqrt.f32 %v1198_v29  ;;  %v67_v29 = vld [vmem:[#allocation6 + $0xc8] sm:$0xff] }
 0xc37   :  { %v2033_v30 = vpop.eup %2032 }
 0xc38   :  { %v1201_v32 = vmul.f32 %v2033_v30, %v1185_v18  ;;  %v1937_v30 = vpack.c.bf16 %v67_v29, %v66_v28 }
 0xc3a   :  { %v1207_v36 = vmul.f32 %v1628_v31, %v1201_v32 }
 0xc3b   :  { %v2035_v37 = vpop.eup %2034 }
 0xc3c   :  { %v1202_v38 = vmul.f32 %v2035_v37, %v1186_v20  ;;  %v1213_v21 = vadd.f32 %v1629_v35, %v1207_v36 }
 0xc3e   :  { %v1208_v39 = vmul.f32 %v1628_v31, %v1202_v38  ;;  %1806 = vmatprep.mubr.msk.f32.mxu0 %vm171_vm1, %v1213_v21 }
 0xc40   :  { %v1214_v40 = vadd.f32 %v1629_v35, %v1208_v39  ;;  %v1639_v35 = vld [vmem:[#allocation6 + $0x130] ss:$0 sm:$0xff] }
 0xc42   :  { %1807 = vmatmul.mubr.msk.f32.vlgmr.msra.gmra.mrb[10].mxu0 %vm171_vm1, %v1214_v40 }
 0xc43   :  { %1832 = vmatprep.mubr.msk.f32.mxu0 %vm2130_vm8, %v2131_v5 }
 0xd15   :  { %v1808_v45 = vpop.f32.mrb[10].mxu0 }
 0xd16   :  { %v1297_v46 = vadd.f32 %v1808_v45, %v1630_v44  ;;  %v1291_v47 = vpop.f32.mrb[11].mxu0 }
 0xd17   :  { %v1292_v48 = vadd.f32 %v1630_v44, %v1291_v47 }
 0xd18   :  { %v1301_v50 = vmax.f32 %v1297_v46, 0.0 }
 0xd19   :  { %v1300_v49 = vmax.f32 %v1292_v48, 0.0 }
 0xd1b   :  { %1825 = vmatprep.mubr.msk.f32.mxu1 %vm1306_vm7, %v1300_v49 }
 0xd1c   :  { %1826 = vmatmul.mubr.msk.f32.vlgmr.msra.gmra.mrb[12].mxu1 %vm1306_vm7, %v1301_v50 }
 0xdef   :  { %v1827_v52 = vpop.f32.mrb[12].mxu1 }
 0xdf0   :  { %v1385_v53 = vadd.f32 %v1827_v52, %v1633_v51  ;;  %v1379_v54 = vpop.f32.mrb[13].mxu1 }
 0xdf1   :  { %v1380_v55 = vadd.f32 %v1633_v51, %v1379_v54 }
 0xdf2   :  { %v1389_v56 = vadd.f32 %v1385_v53, %v1214_v40 }
 0xdf3   :  { %v1388_v57 = vadd.f32 %v1380_v55, %v1213_v21 }
 0xdf4   :  { %v1393_v58 = vsel %vm171_vm1, %v1389_v56, 0.0 }
 0xdf5   :  { %1394 = vadd.xlane.f32.xlu0 %v1393_v58  ;;  %v1390_v59 = vsel %vm171_vm1, %v1388_v57, 0.0 }
 0xdf6   :  { %1391 = vadd.xlane.f32.xlu1 %v1390_v59 }
 0xe82   :  { %v1395_v60 = vpop.xlane.xlu0 %1394 }
 0xe83   :  { %v1397_v61 = vmul.f32 0.03125, %v1395_v60  ;;  %v1392_v62 = vpop.xlane.xlu1 %1391 }
 0xe84   :  { %v1396_v63 = vmul.f32 0.03125, %v1392_v62 }
 0xe85   :  { %v1399_v0 = vsub.f32 %v1389_v56, %v1397_v61 }
 0xe86   :  { %v1398_v1 = vsub.f32 %v1388_v57, %v1396_v63 }
 0xe87   :  { %v1401_v2 = vmul.f32 %v1399_v0, %v1399_v0 }
 0xe88   :  { %v1400_v3 = vmul.f32 %v1398_v1, %v1398_v1 }
 0xe89   :  { %v1405_v20 = vsel %vm171_vm1, %v1401_v2, 0.0 }
 0xe8a   :  { %1406 = vadd.xlane.f32.xlu0 %v1405_v20  ;;  %v1402_v18 = vsel %vm171_vm1, %v1400_v3, 0.0 }
 0xe8b   :  { %1403 = vadd.xlane.f32.xlu1 %v1402_v18 }
 0xf17   :  { %v1407_v6 = vpop.xlane.xlu0 %1406 }
 0xf18   :  { %v1409_v15 = vmul.f32 0.03125, %v1407_v6  ;;  %v1404_v14 = vpop.xlane.xlu1 %1403 }
 0xf19   :  { %v1408_v7 = vmul.f32 0.03125, %v1404_v14 }
 0xf1a   :  { %v1411_v8 = vadd.f32 1e-05, %v1409_v15 }
 0xf1b   :  { %v1410_v9 = vadd.f32 1e-05, %v1408_v7 }
 0xf1c   :  { %2036 = vrsqrt.f32 %v1411_v8 }
 0xf1d   :  { %2038 = vrsqrt.f32 %v1410_v9 }
 0xf26   :  { %v2037_v10 = vpop.eup %2036 }
 0xf27   :  { %v2039_v12 = vpop.eup %2038  ;;  %v1415_v13 = vmul.f32 %v2037_v10, %v1399_v0 }
 0xf28   :  { %v1414_v16 = vmul.f32 %v2039_v12, %v1398_v1 }
 0xf29   :  { %v1421_v25 = vmul.f32 %v1636_v11, %v1415_v13 }
 0xf2a   :  { %v1420_v19 = vmul.f32 %v1636_v11, %v1414_v16 }
 0xf2b   :  { %v1427_v22 = vadd.f32 %v1637_v17, %v1421_v25 }
 0xf2c   :  { %v1426_v23 = vadd.f32 %v1637_v17, %v1420_v19 }
 0xf2e   :  { %v1931_v27 = vpack.c.bf16 %v1427_v22, %v1426_v23 }
 0xf30   :  { %1932 = vmatpush3.bf16.msra.mxu0 %v1931_v27 }
 0xf31   :  { %1933 = vmatprep.subr.bf16.mxu0 %v2129_v4 }
 0xf33   :  { %1833 = vmatmul.mubr.msk.f32.vlgmr.msra.gmra.mrb[12].mxu0 %vm85_vm0, %v70_v33 }
 0xf34   :  { %1935 = vmatpush3.bf16.msra.mxu0 %v1934_v34  ;;  %1843 = vmatprep.mubr.msk.f32.mxu0 %vm2130_vm8, %v2131_v5 }
 0xf35   :  { %1936 = vmatprep.subr.bf16.mxu0 %v2129_v4 }
 0xf38   :  { %1938 = vmatpush3.bf16.msra.mxu0 %v1937_v30 }
0x1006   :  { %v1497_v31 = vpop.f32.mrb[12].mxu0 }
0x1007   :  { %v1834_v32 = vpop.f32.mrb[13].mxu0  ;;  %1844 = vmatmul.mubr.msk.f32.vlgmr.msra.gmra.mrb[14].mxu0 %vm171_vm1, %v1497_v31 }
0x10da   :  { %v1574_v36 = vpop.f32.mrb[14].mxu0 }
0x10db   :  { %v1575_v37 = vadd.f32 %v1639_v35, %v1574_v36  ;;  %v1845_v38 = vpop.f32.mrb[15].mxu0 }
0x10dd   :  { %1578 = vst [vmem:[#allocation8] sm:$0x3] %v1575_v37 }
0x10de   :  { %2095 = shalt.err (!%p2092_p6)
}
0x10df   :  { %s2096_s23 = scalar_lea.hbm %s2316_s2, 32 }
0x10e0   :  { %p2097_p7 = scmp.ne.s32.totalorder %s2316_s2, %s2096_s23  ;;  %p2100_p8 = scmp.lt.u32.totalorder %s2096_s23, %s2316_s2 }
0x10e2   :  { %p2102_p9 = pnand %p2100_p8, %p2097_p7 }
0x10e4   :  { %2105 = shalt.err (!%p2102_p9)
}
0x10e5   :  { %1588 = dma.vmem_to_hbm [thread:$0]  %s1586_s19, 32, %s2316_s2, [#allocation5]  }
0x10e6   :  { %2110 = dma.done.wait [#allocation5], 32  }
0x10e7   :  { %2111 = vsyncadd [#allocation5], 4294967264 }
0x10e8   :  { %1592 = vsyncpa [#allocation4], 1 }
0x10e9   :  { %1593 = vsyncpa [#allocation7], 1 }
0x10ea   :  { %1594 = vsyncpa [#allocation5], 1 }

</bundles_post_ra>
